<compile_context>
chip_gen: v7x
topology: tpu7x:2x2x1
jax: 0.10.0
libtpu: 0.0.40
codegen_flags: <defaults>
</compile_context>

<pallas_src>
import math
import functools

import jax
import jax.numpy as jnp
from jax import lax
from jax.experimental import pallas as pl
from jax.experimental.pallas import tpu as pltpu

NUM_GROUPS = 32
EPS = 1e-5  # torch.nn.GroupNorm default


# ---------------------------------------------------------------------------
# Kernel A1: GroupNorm statistics (per-channel sum / sum-of-squares), tiled over S
# ---------------------------------------------------------------------------
def _gn_stats_kernel(x_ref, sum_ref, sq_ref):
    si = pl.program_id(1)

    @pl.when(si == 0)
    def _():
        sum_ref[...] = jnp.zeros_like(sum_ref)
        sq_ref[...] = jnp.zeros_like(sq_ref)

    x = x_ref[0].astype(jnp.float32)                     # (ts, C)
    sum_ref[0] += jnp.sum(x, axis=0, keepdims=True)      # (1, C)
    sq_ref[0] += jnp.sum(x * x, axis=0, keepdims=True)   # (1, C)


# ---------------------------------------------------------------------------
# Kernel A2: normalize (precomputed per-channel scale/shift) + fused QKV projection
# ---------------------------------------------------------------------------
def _norm_qkv_kernel(x_ref, scale_ref, shift_ref, wqkv_ref, bqkv_ref,
                     q_ref, k_ref, v_ref, *, c):
    x = x_ref[0].astype(jnp.float32)                                   # (ts, C)
    xn = (x * scale_ref[0] + shift_ref[0]).astype(jnp.bfloat16)        # (ts, C)
    # single MXU sweep over xn: fused (C, 3C) weight, f32 accumulation
    qkv = jnp.dot(xn, wqkv_ref[...],
                  preferred_element_type=jnp.float32) + bqkv_ref[...]  # (ts, 3C)
    q_ref[0] = qkv[:, :c].astype(jnp.bfloat16)        # 1/sqrt(C) already folded in
    k_ref[0] = qkv[:, c:2 * c].astype(jnp.bfloat16)
    v_ref[0] = qkv[:, 2 * c:].astype(jnp.bfloat16)


# ---------------------------------------------------------------------------
# Kernel B (resident K/V): single-pass softmax per q tile + out proj + residual
# ---------------------------------------------------------------------------
def _attn_resident_kernel(q_ref, k_ref, v_ref, wo_ref, bo_ref, res_ref, o_ref):
    q = q_ref[0]                                        # (tq, C) bf16, pre-scaled
    k = k_ref[0]                                        # (S, C) bf16, VMEM-resident
    v = v_ref[0]                                        # (S, C) bf16, VMEM-resident
    s = lax.dot_general(q, k, (((1,), (1,)), ((), ())),
                        preferred_element_type=jnp.float32)             # (tq, S)
    m = jnp.max(s, axis=-1, keepdims=True)
    # bf16 exp argument: EUP bf16 path on v6e/v7x; on v5e it only adds cheap casts
    p = jnp.exp((s - m).astype(jnp.bfloat16))                           # (tq, S) bf16
    l = jnp.sum(p.astype(jnp.float32), axis=-1, keepdims=True)          # (tq, 1)
    attn = jnp.dot(p, v, preferred_element_type=jnp.float32)            # (tq, C)
    attn = attn * pl.reciprocal(l, approx=True)
    out = jnp.dot(attn.astype(jnp.bfloat16), wo_ref[...],
                  preferred_element_type=jnp.float32) + bo_ref[...]
    o_ref[0] = (out + res_ref[0].astype(jnp.float32)).astype(o_ref.dtype)


# ---------------------------------------------------------------------------
# Kernel B (flash fallback): online softmax, for shapes where K/V do not fit VMEM
# ---------------------------------------------------------------------------
def _attn_flash_kernel(q_ref, k_ref, v_ref, wo_ref, bo_ref, res_ref, o_ref,
                       m_sc, l_sc, acc_sc):
    kt = pl.program_id(2)

    @pl.when(kt == 0)
    def _():
        m_sc[...] = jnp.full_like(m_sc, -jnp.inf)
        l_sc[...] = jnp.zeros_like(l_sc)
        acc_sc[...] = jnp.zeros_like(acc_sc)

    s = lax.dot_general(q_ref[0], k_ref[0], (((1,), (1,)), ((), ())),
                        preferred_element_type=jnp.float32)             # (tq, tk)
    m_prev = m_sc[...]
    m_new = jnp.maximum(m_prev, jnp.max(s, axis=-1, keepdims=True))
    alpha = jnp.exp(m_prev - m_new)
    p = jnp.exp((s - m_new).astype(jnp.bfloat16))                       # (tq, tk) bf16
    l_sc[...] = alpha * l_sc[...] + jnp.sum(p.astype(jnp.float32), axis=-1, keepdims=True)
    acc_sc[...] = alpha * acc_sc[...] + jnp.dot(p, v_ref[0],
                                                preferred_element_type=jnp.float32)
    m_sc[...] = m_new

    @pl.when(kt == pl.num_programs(2) - 1)
    def _():
        attn = acc_sc[...] * pl.reciprocal(l_sc[...], approx=True)      # (tq, C)
        out = jnp.dot(attn.astype(jnp.bfloat16), wo_ref[...],
                      preferred_element_type=jnp.float32) + bo_ref[...]
        o_ref[0] = (out + res_ref[0].astype(jnp.float32)).astype(o_ref.dtype)


# ---------------------------------------------------------------------------
# Sizing helpers
# ---------------------------------------------------------------------------
def _vmem_capacity_bytes():
    """Per-generation VMEM capacity (128 MiB v5e/v6e, 64 MiB v7x); conservative fallback."""
    try:
        info = pltpu.get_tpu_info()
        cap = getattr(info, "vmem_capacity_bytes", None)
        if cap:
            return int(cap)
    except Exception:
        pass
    return 64 * 1024 * 1024


def _vmem_limit(estimate, capacity):
    headroom = 8 * 1024 * 1024          # leave room for compiler-internal scratch
    return int(min(max(2 * estimate, 32 * 1024 * 1024), capacity - headroom))


def _pick_tile(s, target, multiple=128):
    """Largest divisor of s that is <= target, preferring multiples of 128 (full MXU
    tiles / lane-dense layout), falling back to multiples of 8, then to s itself."""
    if s <= target:
        return s
    for m in (multiple, 8):
        best, t = None, m
        while t <= target:
            if s % t == 0:
                best = t
            t += m
        if best is not None:
            return best
    return s


def _bytes_stats(ts, c):
    return 2 * ts * c * 2 + 2 * ts * c * 4 + 8 * c * 4


def _bytes_norm_qkv(ts, c):
    return (2 * ts * c * 2            # x tiles (bf16, double-buffered)
            + 2 * ts * c * 4          # f32 x / xn temporaries
            + ts * 3 * c * 4          # fused qkv f32 matmul result
            + ts * c * 2              # xn bf16
            + 3 * 2 * ts * c * 2      # q/k/v output tiles (double-buffered)
            + 3 * c * c * 2 + 8 * c * 4)


def _bytes_attn_resident(s, c, tq):
    return (2 * tq * c * 2            # q tiles
            + 2 * 2 * s * c * 2       # K and V resident blocks (double-buffered)
            + 2 * tq * s * 4          # scores + exp-arg temporaries (f32)
            + tq * s * 2              # p (bf16)
            + 3 * tq * c * 4          # attn / out f32 temporaries
            + 2 * tq * c * 2          # residual tiles (bf16)
            + 2 * tq * c * 2          # output tiles (bf16)
            + c * c * 2 + c * 4)


def _bytes_attn_flash(c, tq, tk):
    return (2 * tq * c * 2 + 2 * 2 * tk * c * 2
            + 2 * tq * tk * 4 + tq * tk * 2
            + 3 * tq * c * 4 + 4 * tq * 4
            + 2 * tq * c * 2 + 2 * tq * c * 2
            + c * c * 2 + c * 4
            + tq * c * 4)             # acc scratch


# ---------------------------------------------------------------------------
# Wrapper
# ---------------------------------------------------------------------------
def vae_bloco_atencao(x_nchw, params, *, attn_impl=None, ts=None, tq=None, tk=None):
    n, c, h, w = x_nchw.shape
    assert c % NUM_GROUPS == 0, "GroupNorm(32, C) requires C % 32 == 0"
    s = h * w
    cpg = c // NUM_GROUPS
    scale = 1.0 / math.sqrt(c)          # 1 head -> d_head = C
    vmem_cap = _vmem_capacity_bytes()

    # NCHW -> (N, S, C), cast to bf16 once (halves x traffic for the 3 kernels that read
    # it; GroupNorm stats still accumulate in f32).
    # TODO(synk): keep activations in (N, S, C) bf16 across the VAE decoder so these
    #             NCHW<->NSC transposes disappear entirely.
    x_nsc = jnp.transpose(x_nchw.reshape(n, c, s), (0, 2, 1)).astype(jnp.bfloat16)

    gamma = params["gamma"].astype(jnp.float32)        # (1, C)
    beta = params["beta"].astype(jnp.float32)          # (1, C)
    # fuse wq/wk/wv (and biases); fold the 1/sqrt(C) softmax scale into the q column block
    wqkv = jnp.concatenate([params["wq"] * scale, params["wk"], params["wv"]],
                           axis=1).astype(jnp.bfloat16)            # (C, 3C)
    bqkv = jnp.concatenate([params["bq"] * scale, params["bk"], params["bv"]],
                           axis=1).astype(jnp.float32)             # (1, 3C)
    wo = params["wo"].astype(jnp.bfloat16)
    bo = params["bo"].astype(jnp.float32)

    ts = ts or _pick_tile(s, 1024)
    assert s % ts == 0

    # ---------------- Kernel A1: GroupNorm statistics ----------------
    stats_shape = jax.ShapeDtypeStruct((n, 1, c), jnp.float32)
    ch_sum, ch_sq = pl.pallas_call(
        _gn_stats_kernel,
        out_shape=(stats_shape, stats_shape),
        grid_spec=pltpu.PrefetchScalarGridSpec(
            num_scalar_prefetch=0,
            grid=(n, s // ts),
            in_specs=[pl.BlockSpec((1, ts, c), lambda b, si: (b, si, 0))],
            out_specs=(pl.BlockSpec((1, 1, c), lambda b, si: (b, 0, 0)),
                       pl.BlockSpec((1, 1, c), lambda b, si: (b, 0, 0))),
        ),
        compiler_params=pltpu.CompilerParams(
            dimension_semantics=("parallel", "arbitrary"),
            vmem_limit_bytes=_vmem_limit(_bytes_stats(ts, c), vmem_cap)),
    )(x_nsc)

    # tiny per-(batch, channel) affine from the group statistics (plain JAX, N*C elems)
    cnt = float(s * cpg)
    g_sum = ch_sum.reshape(n, NUM_GROUPS, cpg).sum(axis=-1)            # (N, G)
    g_sq = ch_sq.reshape(n, NUM_GROUPS, cpg).sum(axis=-1)              # (N, G)
    mean_g = g_sum / cnt
    var_g = jnp.maximum(g_sq / cnt - mean_g * mean_g, 0.0)
    rstd_g = lax.rsqrt(var_g + EPS)
    mean_c = jnp.repeat(mean_g, cpg, axis=-1)                          # (N, C)
    rstd_c = jnp.repeat(rstd_g, cpg, axis=-1)                          # (N, C)
    scale_c = (rstd_c * gamma)[:, None, :]                             # (N, 1, C)
    shift_c = (beta - mean_c * rstd_c * gamma)[:, None, :]             # (N, 1, C)

    # ---------------- Kernel A2: normalize + fused QKV ----------------
    kernel_a2 = functools.partial(_norm_qkv_kernel, c=c)
    qkv_shape = jax.ShapeDtypeStruct((n, s, c), jnp.bfloat16)
    out_tile_spec = pl.BlockSpec((1, ts, c), lambda b, si: (b, si, 0))
    q_nsc, k_nsc, v_nsc = pl.pallas_call(
        kernel_a2,
        out_shape=(qkv_shape, qkv_shape, qkv_shape),
        grid_spec=pltpu.PrefetchScalarGridSpec(
            num_scalar_prefetch=0,
            grid=(n, s // ts),
            in_specs=[
                pl.BlockSpec((1, ts, c), lambda b, si: (b, si, 0)),    # x
                pl.BlockSpec((1, 1, c), lambda b, si: (b, 0, 0)),      # scale_c
                pl.BlockSpec((1, 1, c), lambda b, si: (b, 0, 0)),      # shift_c
                pl.BlockSpec((c, 3 * c), lambda b, si: (0, 0)),        # wqkv
                pl.BlockSpec((1, 3 * c), lambda b, si: (0, 0)),        # bqkv
            ],
            out_specs=(out_tile_spec, out_tile_spec, out_tile_spec),
        ),
        compiler_params=pltpu.CompilerParams(
            dimension_semantics=("parallel", "parallel"),
            vmem_limit_bytes=_vmem_limit(_bytes_norm_qkv(ts, c), vmem_cap)),
    )(x_nsc, scale_c, shift_c, wqkv, bqkv)

    # ---------------- Kernel B: attention + out proj + residual ----------------
    tq = tq or _pick_tile(s, 512)
    tk = tk or _pick_tile(s, 1024)
    assert s % tq == 0 and s % tk == 0

    if attn_impl is None:
        resident_est = _bytes_attn_resident(s, c, tq)
        attn_impl = "resident" if resident_est <= vmem_cap - 12 * 1024 * 1024 else "flash"

    out_shape = jax.ShapeDtypeStruct((n, s, c), jnp.bfloat16)

    if attn_impl == "resident":
        out_nsc = pl.pallas_call(
            _attn_resident_kernel,
            out_shape=out_shape,
            grid_spec=pltpu.PrefetchScalarGridSpec(
                num_scalar_prefetch=0,
                grid=(n, s // tq),
                in_specs=[
                    pl.BlockSpec((1, tq, c), lambda b, qi: (b, qi, 0)),  # q (scaled)
                    pl.BlockSpec((1, s, c), lambda b, qi: (b, 0, 0)),    # K resident
                    pl.BlockSpec((1, s, c), lambda b, qi: (b, 0, 0)),    # V resident
                    pl.BlockSpec((c, c), lambda b, qi: (0, 0)),          # wo
                    pl.BlockSpec((1, c), lambda b, qi: (0, 0)),          # bo
                    pl.BlockSpec((1, tq, c), lambda b, qi: (b, qi, 0)),  # residual (bf16)
                ],
                out_specs=pl.BlockSpec((1, tq, c), lambda b, qi: (b, qi, 0)),
            ),
            compiler_params=pltpu.CompilerParams(
                dimension_semantics=("parallel", "parallel"),
                vmem_limit_bytes=_vmem_limit(_bytes_attn_resident(s, c, tq), vmem_cap)),
        )(q_nsc, k_nsc, v_nsc, wo, bo, x_nsc)
    else:
        out_nsc = pl.pallas_call(
            _attn_flash_kernel,
            out_shape=out_shape,
            grid_spec=pltpu.PrefetchScalarGridSpec(
                num_scalar_prefetch=0,
                grid=(n, s // tq, s // tk),
                in_specs=[
                    pl.BlockSpec((1, tq, c), lambda b, qi, ki: (b, qi, 0)),  # q (scaled)
                    pl.BlockSpec((1, tk, c), lambda b, qi, ki: (b, ki, 0)),  # k
                    pl.BlockSpec((1, tk, c), lambda b, qi, ki: (b, ki, 0)),  # v
                    pl.BlockSpec((c, c), lambda b, qi, ki: (0, 0)),          # wo
                    pl.BlockSpec((1, c), lambda b, qi, ki: (0, 0)),          # bo
                    pl.BlockSpec((1, tq, c), lambda b, qi, ki: (b, qi, 0)),  # residual
                ],
                out_specs=pl.BlockSpec((1, tq, c), lambda b, qi, ki: (b, qi, 0)),
                scratch_shapes=[
                    pltpu.VMEM((tq, 1), jnp.float32),   # m (running max)
                    pltpu.VMEM((tq, 1), jnp.float32),   # l (running denom)
                    pltpu.VMEM((tq, c), jnp.float32),   # acc
                ],
            ),
            compiler_params=pltpu.CompilerParams(
                dimension_semantics=("parallel", "parallel", "arbitrary"),
                vmem_limit_bytes=_vmem_limit(_bytes_attn_flash(c, tq, tk), vmem_cap)),
        )(q_nsc, k_nsc, v_nsc, wo, bo, x_nsc)

    # (N, S, C) bf16 -> NCHW, back to the caller's dtype (f32 for the reference module)
    return jnp.transpose(out_nsc, (0, 2, 1)).reshape(n, c, h, w).astype(x_nchw.dtype)


# ---------------------------------------------------------------------------
# Pure-JAX reference mirroring the PyTorch forward pass (f32)
# ---------------------------------------------------------------------------
def reference(x_nchw, params):
    n, c, h, w = x_nchw.shape
    cpg = c // NUM_GROUPS
    xr = x_nchw.reshape(n, NUM_GROUPS, cpg, h, w)
    mean = xr.mean(axis=(2, 3, 4), keepdims=True)
    var = xr.var(axis=(2, 3, 4), keepdims=True)
    xn = (xr - mean) / jnp.sqrt(var + EPS)
    xn = xn.reshape(n, c, h, w) * params["gamma"].reshape(1, c, 1, 1) \
        + params["beta"].reshape(1, c, 1, 1)
    xs = jnp.transpose(xn.reshape(n, c, h * w), (0, 2, 1))        # (N, S, C)
    q = xs @ params["wq"] + params["bq"]
    k = xs @ params["wk"] + params["bk"]
    v = xs @ params["wv"] + params["bv"]
    scores = (q @ jnp.swapaxes(k, -1, -2)) / math.sqrt(c)         # 1 head -> d_head = C
    p = jax.nn.softmax(scores, axis=-1)
    out = p @ v
    out = out @ params["wo"] + params["bo"]
    out = jnp.transpose(out, (0, 2, 1)).reshape(n, c, h, w)
    return out + x_nchw


def make_params(key, c):
    ks = jax.random.split(key, 6)
    scale = 0.1
    return {
        "gamma": jnp.ones((1, c), jnp.float32),
        "beta": jnp.zeros((1, c), jnp.float32),
        "wq": scale * jax.random.normal(ks[0], (c, c), jnp.float32),
        "bq": scale * jax.random.normal(ks[1], (1, c), jnp.float32),
        "wk": scale * jax.random.normal(ks[2], (c, c), jnp.float32),
        "bk": jnp.zeros((1, c), jnp.float32),
        "wv": scale * jax.random.normal(ks[3], (c, c), jnp.float32),
        "bv": jnp.zeros((1, c), jnp.float32),
        "wo": scale * jax.random.normal(ks[4], (c, c), jnp.float32),
        "bo": scale * jax.random.normal(ks[5], (1, c), jnp.float32),
    }


if __name__ == "__main__":
    key = jax.random.PRNGKey(0)
    kx, kp = jax.random.split(key)

    # Small shapes: batch=2, channels=32 (GroupNorm(32, C) needs C % 32 == 0), 8x8 spatial.
    N, C, H, W = 2, 32, 8, 8
    x = jax.random.normal(kx, (N, C, H, W), jnp.float32)
    params = make_params(kp, C)
    ref = reference(x, params)

    # bf16 activations/IO with f32 MXU accumulation -> bf16-level tolerance vs f32 reference
    tol = dict(rtol=2e-2, atol=2e-2)

    # Path 1: resident-K/V attention (auto-selected at these shapes).
    out_res = jax.block_until_ready(vae_bloco_atencao(x, params))
    assert out_res.shape == (N, C, H, W)
    assert jnp.allclose(out_res, ref, **tol), float(jnp.max(jnp.abs(out_res - ref)))

    # Path 2: flash fallback (forced, with small tiles so the online-softmax loop is
    # exercised across multiple K/V steps).
    out_fl = jax.block_until_ready(
        vae_bloco_atencao(x, params, attn_impl="flash", ts=32, tq=32, tk=32))
    assert jnp.allclose(out_fl, ref, **tol), float(jnp.max(jnp.abs(out_fl - ref)))

    print("KERNEL_OK")
</pallas_src>

<mosaic_0001>
module attributes {stable_mosaic.version = 11 : i64} {
  func.func @_gn_stats_kernel(%arg0: i32, %arg1: i32, %arg2: memref<1x64x32xbf16, #tpu.memory_space<vmem>>, %arg3: memref<1x1x32xf32, #tpu.memory_space<vmem>>, %arg4: memref<1x1x32xf32, #tpu.memory_space<vmem>>) attributes {dimension_semantics = [#tpu.dimension_semantics<parallel>, #tpu.dimension_semantics<arbitrary>], iteration_bounds = array<i64: 2, 1>, scalar_prefetch = 0 : i64, scratch_operands = 0 : i64, tpu.core_type = #tpu.core_type<tc>, window_params = [{transform_indices = @transform_0, window_bounds = array<i64: 1, 64, 32>}, {transform_indices = @transform_1, window_bounds = array<i64: 1, 1, 32>}, {transform_indices = @transform_2, window_bounds = array<i64: 1, 1, 32>}]} {
    %c0_i32 = arith.constant 0 : i32
    %0 = arith.cmpi eq, %arg1, %c0_i32 : i32
    %1 = arith.extui %0 : i1 to i32
    %c0_i32_0 = arith.constant 0 : i32
    %2 = arith.cmpi ne, %1, %c0_i32_0 : i32
    scf.if %2 {
      %cst_16 = arith.constant 0.000000e+00 : f32
      %23 = vector.broadcast %cst_16 : f32 to vector<1x1x32xf32>
      %c0_17 = arith.constant 0 : index
      %c0_18 = arith.constant 0 : index
      %c0_19 = arith.constant 0 : index
      %24 = vector.load %arg3[%c0_17, %c0_18, %c0_19] : memref<1x1x32xf32, #tpu.memory_space<vmem>>, vector<1x1x32xf32>
      tpu.vector_store %arg3[%c0_17, %c0_18, %c0_19], %23 {strides = array<i32>} : memref<1x1x32xf32, #tpu.memory_space<vmem>>, vector<1x1x32xf32>,
      %cst_20 = arith.constant 0.000000e+00 : f32
      %25 = vector.broadcast %cst_20 : f32 to vector<1x1x32xf32>
      %c0_21 = arith.constant 0 : index
      %c0_22 = arith.constant 0 : index
      %c0_23 = arith.constant 0 : index
      %26 = vector.load %arg4[%c0_21, %c0_22, %c0_23] : memref<1x1x32xf32, #tpu.memory_space<vmem>>, vector<1x1x32xf32>
      tpu.vector_store %arg4[%c0_21, %c0_22, %c0_23], %25 {strides = array<i32>} : memref<1x1x32xf32, #tpu.memory_space<vmem>>, vector<1x1x32xf32>,
    } else {
    }
    %c0 = arith.constant 0 : index
    %c0_1 = arith.constant 0 : index
    %c0_2 = arith.constant 0 : index
    %3 = vector.load %arg2[%c0, %c0_1, %c0_2] : memref<1x64x32xbf16, #tpu.memory_space<vmem>>, vector<1x64x32xbf16>
    %4 = vector.shape_cast %3 : vector<1x64x32xbf16> to vector<64x32xbf16>
    %5 = arith.extf %4 : vector<64x32xbf16> to vector<64x32xf32>
    %c0_3 = arith.constant 0 : index
    %c0_4 = arith.constant 0 : index
    %c0_5 = arith.constant 0 : index
    %6 = vector.load %arg3[%c0_3, %c0_4, %c0_5] : memref<1x1x32xf32, #tpu.memory_space<vmem>>, vector<1x1x32xf32>
    %7 = vector.shape_cast %6 : vector<1x1x32xf32> to vector<1x32xf32>
    %cst = arith.constant dense<0.000000e+00> : vector<32xf32>
    %8 = vector.multi_reduction <add>, %5, %cst [0] : vector<64x32xf32> to vector<32xf32>
    %9 = vector.shape_cast %8 : vector<32xf32> to vector<1x32xf32>
    %10 = arith.addf %7, %9 : vector<1x32xf32>
    %c0_6 = arith.constant 0 : index
    %c0_7 = arith.constant 0 : index
    %c0_8 = arith.constant 0 : index
    %11 = vector.load %arg3[%c0_6, %c0_7, %c0_8] : memref<1x1x32xf32, #tpu.memory_space<vmem>>, vector<1x1x32xf32>
    %12 = vector.shape_cast %11 : vector<1x1x32xf32> to vector<1x32xf32>
    %13 = vector.shape_cast %10 : vector<1x32xf32> to vector<1x1x32xf32>
    tpu.vector_store %arg3[%c0_6, %c0_7, %c0_8], %13 {strides = array<i32>} : memref<1x1x32xf32, #tpu.memory_space<vmem>>, vector<1x1x32xf32>,
    %c0_9 = arith.constant 0 : index
    %c0_10 = arith.constant 0 : index
    %c0_11 = arith.constant 0 : index
    %14 = vector.load %arg4[%c0_9, %c0_10, %c0_11] : memref<1x1x32xf32, #tpu.memory_space<vmem>>, vector<1x1x32xf32>
    %15 = vector.shape_cast %14 : vector<1x1x32xf32> to vector<1x32xf32>
    %16 = arith.mulf %5, %5 : vector<64x32xf32>
    %cst_12 = arith.constant dense<0.000000e+00> : vector<32xf32>
    %17 = vector.multi_reduction <add>, %16, %cst_12 [0] : vector<64x32xf32> to vector<32xf32>
    %18 = vector.shape_cast %17 : vector<32xf32> to vector<1x32xf32>
    %19 = arith.addf %15, %18 : vector<1x32xf32>
    %c0_13 = arith.constant 0 : index
    %c0_14 = arith.constant 0 : index
    %c0_15 = arith.constant 0 : index
    %20 = vector.load %arg4[%c0_13, %c0_14, %c0_15] : memref<1x1x32xf32, #tpu.memory_space<vmem>>, vector<1x1x32xf32>
    %21 = vector.shape_cast %20 : vector<1x1x32xf32> to vector<1x32xf32>
    %22 = vector.shape_cast %19 : vector<1x32xf32> to vector<1x1x32xf32>
    tpu.vector_store %arg4[%c0_13, %c0_14, %c0_15], %22 {strides = array<i32>} : memref<1x1x32xf32, #tpu.memory_space<vmem>>, vector<1x1x32xf32>,
    return
  }
  func.func @transform_0(%arg0: i32, %arg1: i32) -> (i32, i32, i32) {
    %c0_i32 = arith.constant 0 : i32
    %c0_i32_0 = arith.constant 0 : i32
    return %arg0, %arg1, %c0_i32 : i32, i32, i32
  }
  func.func @transform_1(%arg0: i32, %arg1: i32) -> (i32, i32, i32) {
    %c0_i32 = arith.constant 0 : i32
    %c0_i32_0 = arith.constant 0 : i32
    %c0_i32_1 = arith.constant 0 : i32
    return %arg0, %c0_i32, %c0_i32_0 : i32, i32, i32
  }
  func.func @transform_2(%arg0: i32, %arg1: i32) -> (i32, i32, i32) {
    %c0_i32 = arith.constant 0 : i32
    %c0_i32_0 = arith.constant 0 : i32
    %c0_i32_1 = arith.constant 0 : i32
    return %arg0, %c0_i32, %c0_i32_0 : i32, i32, i32
  }
}

</mosaic_0001>

<bundles_post_ra>
// kernel: tpu_custom_call.1
= control target key start
LH: loop header
LB: loop body
LE: loop exit
PB: predicated region body
PF: predicated region fallthrough
CT: control target
= control target key end

     0   :  { %8 = vsyncpa [#allocation3], 0  ;;  %s793_s0 = inlined_call_operand.vmem [shape: bf16[2,64,32], index: 0, kind: input, shape index: {}]   ;;  %s794_s1 = inlined_call_operand.hbm [shape: f32[2,1,32], index: 1, kind: output, shape index: {0}]   ;;  %s795_s2 = inlined_call_operand.hbm [shape: f32[2,1,32], index: 2, kind: output, shape index: {1}]  }
   0x1   :  { %10 = vsyncpa [#allocation3 + $0x1], 0 }
   0x2   :  { %11 = vsyncpa [#allocation5], 0 }
   0x3   :  { %13 = vsyncpa [#allocation5 + $0x1], 0  ;;  %s609_s9 = smov 0   ;;  %s611_s10 = smov 0  }
   0x4   :  { %s613_s11 = smov 0   ;;  %s615_s12 = smov 0  }
   0x5   :  { %s617_s13 = smov 0   ;;  %s619_s14 = smov 0  }
   0x6 LB: > { %s387_s15 = sadd.s32 4294967295, %s589_s14   ;;  %s388_s16 = sadd.s32 4294967294, %s589_s14   ;;  %s589_s14 = sphi %s619_s14, %s19_s14   ;;  %s585_s13 = sphi %s617_s13, %s802_s13   ;;  %s581_s12 = sphi %s615_s12, %s801_s12   ;;  %s577_s11 = sphi %s613_s11, %s800_s11   ;;  %s573_s10 = sphi %s611_s10, %s799_s10   ;;  %s569_s9 = sphi %s609_s9, %s798_s9  }
   0x7   : > { %s31_s17 = sadd.s32 1, %s585_s13  ;;  %s66_s18 = sadd.s32 1, %s577_s11 }
   0x8   : > { %p33_p0 = scmp.ge.s32.totalorder %s31_s17, 2  ;;  %p76_p1 = scmp.ne.s32.totalorder %s577_s11, %s573_s10 }
   0x9   : > { %p77_p2 = scmp.eq.s32.totalorder %s387_s15, 1  ;;  %p82_p3 = scmp.ne.s32.totalorder %s573_s10, %s569_s9 }
   0xa   : > { %s804_s17 = smov (%p33_p0, %s31_s17), 0  ;;  %p83_p5 = scmp.eq.s32.totalorder %s388_s16, 1 }
   0xb   : > { %p649_p4 = por %p77_p2, %p76_p1  ;;  %s63_s20 = ssub.s32 %s585_s13, %s804_s17 }
   0xc   : > { %p391_p6 = scmp.ge.s32.totalorder %s589_s14, 1  ;;  %p64_p7 = scmp.eq.s32.totalorder %s63_s20, 0 }
   0xd   : > { %p656_p8 = por %p83_p5, %p82_p3  ;;  %p140_p9 = scmp.lt.s32.totalorder %s589_s14, 3 }
   0xe   : > { %s662_s22 = scalar_select %p64_p7, %s577_s11, %s66_s18  }
   0xf   : > { %p141_p10 = pnand %p391_p6, %p140_p9 }
  0x10   : > { %s665_s23 = sand.u32 (!%p141_p10), 1, %s573_s10   ;;  %vm183_vm0 = vcmask (!%p141_p10), 253952   ;;  %p170_p11 = scmp.lt.s32.totalorder (!%p141_p10), %s581_s12, 1  ;;  %v591_v0 = vmov (!%p141_p10), 0.0   ;;  %vm203_vm1 = vcmask (!%p141_p10), 261120  }
  0x11   : > { %144 = sbr.rel (%p141_p10) target bundleno = 97 (0x61), region = 24  ;;  %s669_s24 = scalar_lea.vmem (!%p141_p10), [#allocation2], %s665_s23 }
  0x12   : > { %184 = vst.msk [vmem:[%s669_s24] sm:$0x1] (!%p141_p10), %vm183_vm0, %v591_v0  ;;  %s674_s25 = scalar_lea.vmem (!%p141_p10), [#allocation4], %s665_s23  ;;  %s394_s3 = sshll.u32 (!%p141_p10), %s581_s12, 4 }
  0x13   : > { %185 = vst.msk [vmem:[%s674_s25] sm:$0x1] (!%p141_p10), %vm183_vm0, %v591_v0  ;;  %s277_s4 = sshll.u32 (!%p141_p10), %s669_s24, 4  ;;  %s706_s7 = scalar_lea.hbm (!%p141_p10), %s794_s1, %s394_s3  ;;  %s708_s4 = int_to_ptr.vmem [resolvable:$true] %s277_s4 }
  0x14   : > { %s290_s8 = sshll.u32 (!%p141_p10), %s674_s25, 4  ;;  %s261_s15 = scalar_lea.sflag (!%p141_p10), [#allocation3], %s665_s23  ;;  %s745_s8 = int_to_ptr.vmem [resolvable:$true] %s290_s8 }
  0x15   : > { %s479_s16 = scalar_lea.vmem (!%p141_p10), %s708_s4, 16  ;;  %s592_s18 = smov (!%p141_p10), [#allocation2]  }
  0x16   : > { %p480_p12 = scmp.ne.s32.totalorder (!%p141_p10), %s708_s4, %s479_s16  ;;  %s483_s20 = sshll.u32 (!%p141_p10), %s592_s18, 4  ;;  %s484_s20 = int_to_ptr.vmem [resolvable:$false] %s483_s20 }
  0x17   : > { %p486_p1 = scmp.lt.s32.totalorder (!%p141_p10), %s708_s4, %s484_s20 }
  0x18   : > { %s171_s26 = scalar_select %p170_p11, %s581_s12, 1 }
  0x19   : > { %v202_v59 = vld [vmem:[%s669_s24] sm:$0x1]  ;;  %p481_p13 = pnand %p480_p12, %p649_p4 }
  0x1a   : > { %s398_s27 = sshll.u32 %s171_s26, 5  ;;  %v228_v0 = vld [vmem:[%s674_s25] sm:$0x1]  ;;  %s485_s26 = scalar_lea.vmem %s484_s20, 32 }
  0x1b   : > { %s177_s30 = scalar_lea.vmem %s793_s0, %s398_s27  ;;  %p482_p0 = pneg %p481_p13 }
  0x1c   : > { %v400_v1 = vld [vmem:[%s177_s30] sm:$0xff]   ;;  %v415_v2 = vld [vmem:[%s177_s30 + $0x8] sm:$0xff]   ;;  %v416_v3 = vld [vmem:[%s177_s30 + $0x10] sm:$0xff]   ;;  %p487_p2 = scmp.lt.s32.totalorder %s485_s26, %s479_s16 }
  0x1d   : > { %v401_v4 = vunpack.c.l.bf16 %v400_v1  ;;  %v402_v5 = vunpack.c.h.bf16 %v400_v1  ;;  %v405_v6 = vunpack.c.l.bf16 %v415_v2  ;;  %v406_v7 = vunpack.c.h.bf16 %v415_v2  ;;  %v417_v9 = vld [vmem:[%s177_s30 + $0x18] sm:$0xff]  }
  0x1e   : > { %v409_v8 = vunpack.c.l.bf16 %v416_v3  ;;  %v410_v13 = vunpack.c.h.bf16 %v416_v3  ;;  %v413_v19 = vunpack.c.l.bf16 %v417_v9  ;;  %v414_v29 = vunpack.c.h.bf16 %v417_v9  ;;  %p488_p3 = por %p487_p2, %p486_p1 }
  0x1f   : > { %v204_v10 = vsel %vm203_vm1, %v401_v4, 0.0  ;;  %v205_v11 = vsel %vm203_vm1, %v402_v5, 0.0  ;;  %v207_v12 = vsel %vm203_vm1, %v405_v6, 0.0  ;;  %v209_v15 = vsel %vm203_vm1, %v406_v7, 0.0 }
  0x20   : > { %v206_v14 = vadd.f32 %v205_v11, %v204_v10  ;;  %v229_v16 = vmul.f32 %v401_v4, %v401_v4  ;;  %v230_v17 = vmul.f32 %v402_v5, %v402_v5  ;;  %v231_v18 = vmul.f32 %v405_v6, %v405_v6  ;;  %p489_p5 = pnand %p488_p3, %p482_p0 }
  0x21   : > { %v232_v21 = vmul.f32 %v406_v7, %v406_v7  ;;  %v211_v22 = vsel %vm203_vm1, %v409_v8, 0.0  ;;  %v233_v23 = vmul.f32 %v409_v8, %v409_v8  ;;  %v213_v30 = vsel %vm203_vm1, %v410_v13, 0.0 }
  0x22   : > { %v208_v20 = vadd.f32 %v207_v12, %v206_v14  ;;  %v237_v24 = vsel %vm203_vm1, %v229_v16, 0.0  ;;  %v238_v25 = vsel %vm203_vm1, %v230_v17, 0.0  ;;  %v240_v28 = vsel %vm203_vm1, %v231_v18, 0.0 }
  0x23   : > { %v239_v27 = vadd.f32 %v238_v25, %v237_v24  ;;  %v234_v31 = vmul.f32 %v410_v13, %v410_v13  ;;  %v242_v32 = vsel %vm203_vm1, %v232_v21, 0.0  ;;  %v215_v35 = vsel %vm203_vm1, %v413_v19, 0.0 }
  0x24   : > { %v210_v26 = vadd.f32 %v209_v15, %v208_v20  ;;  %v235_v36 = vmul.f32 %v413_v19, %v413_v19  ;;  %v244_v37 = vsel %vm203_vm1, %v233_v23, 0.0  ;;  %v217_v40 = vsel %vm203_vm1, %v414_v29, 0.0 }
  0x25   : > { %v241_v34 = vadd.f32 %v240_v28, %v239_v27  ;;  %v236_v41 = vmul.f32 %v414_v29, %v414_v29  ;;  %v246_v42 = vsel %vm203_vm1, %v234_v31, 0.0 }
  0x26   : > { %v212_v33 = vadd.f32 %v211_v22, %v210_v26  ;;  %v248_v45 = vsel %vm203_vm1, %v235_v36, 0.0 }
  0x27   : > { %v243_v39 = vadd.f32 %v242_v32, %v241_v34  ;;  %v250_v48 = vsel %vm203_vm1, %v236_v41, 0.0 }
  0x28   : > { %v214_v38 = vadd.f32 %v213_v30, %v212_v33 }
  0x29   : > { %v245_v44 = vadd.f32 %v244_v37, %v243_v39 }
  0x2a   : > { %v216_v43 = vadd.f32 %v215_v35, %v214_v38 }
  0x2b   : > { %v247_v47 = vadd.f32 %v246_v42, %v245_v44 }
  0x2c   : > { %v218_v46 = vadd.f32 %v217_v40, %v216_v43 }
  0x2d   : > { %v249_v50 = vadd.f32 %v248_v45, %v247_v47 }
  0x2e   : > { %v219_v49 = vrot.slane %v218_v46, 4 }
  0x2f   : > { %v251_v52 = vadd.f32 %v250_v48, %v249_v50 }
  0x30   : > { %v220_v51 = vadd.f32 %v219_v49, %v218_v46 }
  0x31   : > { %v252_v54 = vrot.slane %v251_v52, 4 }
  0x32   : > { %v221_v53 = vrot.slane %v220_v51, 2 }
  0x33   : > { %v253_v56 = vadd.f32 %v252_v54, %v251_v52 }
  0x34   : > { %v222_v55 = vadd.f32 %v221_v53, %v220_v51 }
  0x35   : > { %v254_v58 = vrot.slane %v253_v56, 2 }
  0x36   : > { %v223_v57 = vrot.slane %v222_v55, 1 }
  0x37   : > { %v255_v61 = vadd.f32 %v254_v58, %v253_v56 }
  0x38   : > { %v224_v60 = vadd.f32 %v223_v57, %v222_v55 }
  0x39   : > { %v256_v63 = vrot.slane %v255_v61, 1 }
  0x3a   : > { %v225_v62 = vadd.f32 %v224_v60, %v202_v59 }
  0x3b   : > { %v257_v1 = vadd.f32 %v256_v63, %v255_v61 }
  0x3c   : > { %227 = vst.msk [vmem:[%s669_s24] sm:$0x1] %vm183_vm0, %v225_v62 }
  0x3d   : > { %492 = shalt.err (!%p489_p5)
}
  0x3e   : > { %s493_s24 = scalar_lea.hbm %s706_s7, 16  ;;  %s497_s29 = scalar_lea.hbm %s794_s1, 32 }
  0x3f   : > { %p494_p6 = scmp.ne.s32.totalorder %s706_s7, %s493_s24  ;;  %p498_p10 = scmp.lt.u32.totalorder %s706_s7, %s794_s1 }
  0x40   : > { %p499_p11 = scmp.lt.u32.totalorder %s497_s29, %s493_s24  ;;  %p501_p13 = scmp.lt.u32.totalorder %s493_s24, %s706_s7 }
  0x41   : > { %p495_p7 = pnand %p494_p6, %p649_p4 }
  0x42   : > { %p500_p12 = por %p499_p11, %p498_p10 }
  0x43   : > { %p496_p9 = pneg %p495_p7 }
  0x44   : > { %p502_p0 = por %p501_p13, %p500_p12 }
  0x46   : > { %p503_p1 = pnand %p502_p0, %p496_p9 }
  0x48   : > { %506 = shalt.err (!%p503_p1)
}
  0x49   : > { %418 = dma.vmem_to_hbm [thread:$0]  (%p649_p4), %s708_s4, 16, %s706_s7, %s261_s15   ;;  %v258_v2 = vadd.f32 %v257_v1, %v228_v0 }
  0x4a   : > { %s741_s18 = scalar_lea.hbm %s795_s2, %s394_s3  ;;  %s265_s20 = scalar_lea.sflag [#allocation5], %s665_s23 }
  0x4b   : > { %259 = vst.msk [vmem:[%s674_s25] sm:$0x1] %vm183_vm0, %v258_v2  ;;  %s507_s26 = scalar_lea.vmem %s745_s8, 16  ;;  %s593_s12 = smov [#allocation4]  }
  0x4c   : > { %p508_p2 = scmp.ne.s32.totalorder %s745_s8, %s507_s26  ;;  %s511_s4 = sshll.u32 %s593_s12, 4  ;;  %s512_s4 = int_to_ptr.vmem [resolvable:$false] %s511_s4 }
  0x4d   : > { %s513_s7 = scalar_lea.vmem %s512_s4, 32  ;;  %p514_p6 = scmp.lt.s32.totalorder %s745_s8, %s512_s4 }
  0x4e   : > { %p509_p3 = pnand %p508_p2, %p649_p4  ;;  %p515_p7 = scmp.lt.s32.totalorder %s513_s7, %s507_s26 }
  0x50   : > { %p510_p5 = pneg %p509_p3  ;;  %p516_p9 = por %p515_p7, %p514_p6 }
  0x52   : > { %p517_p10 = pnand %p516_p9, %p510_p5 }
  0x54   : > { %520 = shalt.err (!%p517_p10)
}
  0x55   : > { %s521_s23 = scalar_lea.hbm %s741_s18, 16  ;;  %s525_s15 = scalar_lea.hbm %s795_s2, 32 }
  0x56   : > { %p522_p11 = scmp.ne.s32.totalorder %s741_s18, %s521_s23  ;;  %p526_p0 = scmp.lt.u32.totalorder %s741_s18, %s795_s2 }
  0x57   : > { %p527_p1 = scmp.lt.u32.totalorder %s525_s15, %s521_s23  ;;  %p529_p3 = scmp.lt.u32.totalorder %s521_s23, %s741_s18 }
  0x58   : > { %p523_p12 = pnand %p522_p11, %p649_p4 }
  0x59   : > { %p528_p2 = por %p527_p1, %p526_p0 }
  0x5a   : > { %p524_p13 = pneg %p523_p12 }
  0x5b   : > { %p530_p5 = por %p529_p3, %p528_p2 }
  0x5d   : > { %p531_p6 = pnand %p530_p5, %p524_p13 }
  0x5f   : > { %534 = shalt.err (!%p531_p6)
}
  0x60   : > { %419 = dma.vmem_to_hbm [thread:$0]  (%p649_p4), %s745_s8, 16, %s741_s18, %s265_s20  }
  0x61 PF: > { %p429_p7 = scmp.ge.s32.totalorder %s589_s14, 2  ;;  %s302_s28 = sand.u32 1, %s569_s9  }
  0x62   : > { %s303_s29 = scalar_lea.sflag [#allocation3], %s302_s28 }
  0x63   : > { %p423_p9 = pnand %p429_p7, %p656_p8 }
  0x65   : > { %560 = dma.done.wait (!%p423_p9), %s303_s29, 16  }
  0x66   : > { %562 = vsyncadd (!%p423_p9), %s303_s29, 4294967280  ;;  %s311_s30 = scalar_lea.sflag [#allocation5], %s302_s28 }
  0x67   : > { %564 = dma.done.wait (!%p423_p9), %s311_s30, 16  }
  0x68   : > { %566 = vsyncadd (!%p423_p9), %s311_s30, 4294967280  ;;  %s19_s14 = sadd.s32 1, %s589_s14   ;;  %s798_s9 = smov %s573_s10 }
  0x69   : > { %p16_p10 = scmp.ge.s32.totalorder %s19_s14, 4   ;;  %s799_s10 = smov %s577_s11 }
  0x6a   : > { %s800_s11 = smov %s662_s22  ;;  %s801_s12 = smov %s585_s13 }
  0x6b   : > { %s802_s13 = smov %s804_s17  ;;  %18 = sbr.rel (!%p16_p10) target bundleno = 6 (0x6), region = 80 }
  0x72   :  { %315 = vsyncpa [#allocation3], 1 }
  0x73   :  { %317 = vsyncpa [#allocation3 + $0x1], 1 }
  0x74   :  { %318 = vsyncpa [#allocation5], 1 }
  0x75   :  { %320 = vsyncpa [#allocation5 + $0x1], 1 }

</bundles_post_ra>
